<compile_context>
chip_gen: v7x
topology: tpu7x:2x2x1
jax: 0.10.0
libtpu: 0.0.40
codegen_flags: <defaults>
</compile_context>

<pallas_src>
import functools

import jax
import jax.numpy as jnp
from jax.experimental import pallas as pl
from jax.experimental.pallas import tpu as pltpu

LANE = 128       # width of the lane-dense output slab (one vreg lane width)
NEG_BIG = -1e30  # finite "minus infinity" for masked softmax lanes


def actor_critic_kernel(x_ref, w1_ref, b1_ref, w2_ref, b2_ref, out_ref, *,
                        num_actions):
    x = x_ref[...]                                                  # (B, D)

    # Fused layer 1: actor hidden in lanes [0,128), critic hidden in [128,256).
    h = jnp.dot(x, w1_ref[...], preferred_element_type=jnp.float32) + b1_ref[...]
    h = jnp.maximum(h, 0.0)                                         # ReLU, (B, 256)

    # Fused layer 2 (block-diagonal packed weights): one (B,256)x(256,128) pass.
    #   lanes [0, A) -> actor logits, lane A -> critic value, lanes > A -> 0.
    y = jnp.dot(h, w2_ref[...], preferred_element_type=jnp.float32) + b2_ref[...]

    # Numerically-stable softmax over the actor lanes only (masked).
    lane = jax.lax.broadcasted_iota(jnp.int32, y.shape, dimension=1)
    is_logit = lane < num_actions
    logits = jnp.where(is_logit, y, NEG_BIG)
    m = jnp.max(logits, axis=-1, keepdims=True)
    e = jnp.where(is_logit, jnp.exp(logits - m), 0.0)
    denom = jnp.sum(e, axis=-1, keepdims=True)
    probs = e / denom                                               # exact divide

    # Lane-dense (B, 128) output: probs where lane < A, raw y elsewhere
    # (value sits at lane A; remaining lanes are exactly 0 by construction).
    out_ref[...] = jnp.where(is_logit, probs, y).astype(out_ref.dtype)


@jax.jit
def actor_critic_forward(state, params):
    """state: (B, input_dim) f32.  Returns (probs (B, A), value (B, 1))."""
    B, _ = state.shape
    w1a, b1a, w2a, b2a, w1c, b1c, w2c, b2c = params
    H = w1a.shape[1]          # 128
    A = w2a.shape[1]          # num actions
    assert A + 1 <= LANE

    # ---- pack layer 1: (D, 2H) weight, (1, 2H) bias
    w1 = jnp.concatenate([w1a, w1c], axis=1)
    b1 = jnp.concatenate([b1a, b1c], axis=1)

    # ---- pack layer 2 block-diagonally into a lane-dense (2H, 128) weight:
    #   rows [0,H) x cols [0,A)  <- w2a   (actor hidden -> logits)
    #   rows [H,2H) x col A      <- w2c   (critic hidden -> value)
    #   everything else          <- 0
    w2 = jnp.zeros((2 * H, LANE), jnp.float32)
    w2 = w2.at[:H, :A].set(w2a)
    w2 = w2.at[H:, A:A + 1].set(w2c)
    b2 = jnp.zeros((1, LANE), jnp.float32)
    b2 = b2.at[:, :A].set(b2a)
    b2 = b2.at[:, A:A + 1].set(b2c)

    vmem = lambda: pl.BlockSpec(memory_space=pltpu.VMEM)
    out = pl.pallas_call(
        functools.partial(actor_critic_kernel, num_actions=A),
        out_shape=jax.ShapeDtypeStruct((B, LANE), jnp.float32),
        in_specs=[vmem() for _ in range(5)],
        out_specs=vmem(),
    )(state, w1, b1, w2, b2)

    probs = out[:, :A]
    value = out[:, A:A + 1]
    return probs, value


def reference_forward(state, params):
    """Pure-JAX reference matching the PyTorch module semantics."""
    w1a, b1a, w2a, b2a, w1c, b1c, w2c, b2c = params
    h_a = jnp.maximum(state @ w1a + b1a, 0.0)
    probs = jax.nn.softmax(h_a @ w2a + b2a, axis=-1)
    h_c = jnp.maximum(state @ w1c + b1c, 0.0)
    value = h_c @ w2c + b2c
    return probs, value


def init_params(key, input_dim, hidden, output_dim):
    """Deterministic init mimicking torch.nn.Linear (uniform(-1/sqrt(fan_in), +))."""
    ks = jax.random.split(key, 8)

    def linear(kw, kb, fan_in, fan_out):
        bound = 1.0 / jnp.sqrt(jnp.float32(fan_in))
        w = jax.random.uniform(kw, (fan_in, fan_out), jnp.float32, -bound, bound)
        b = jax.random.uniform(kb, (1, fan_out), jnp.float32, -bound, bound)
        return w, b

    w1a, b1a = linear(ks[0], ks[1], input_dim, hidden)
    w2a, b2a = linear(ks[2], ks[3], hidden, output_dim)
    w1c, b1c = linear(ks[4], ks[5], input_dim, hidden)
    w2c, b2c = linear(ks[6], ks[7], hidden, 1)
    return (w1a, b1a, w2a, b2a, w1c, b1c, w2c, b2c)


if __name__ == "__main__":
    # CartPole-like dims: input_dim=4 (state), output_dim=2 (actions), batch=8.
    # NOTE: in a real A3C loop, batch many environments per call to amortize
    # launch overhead; at larger B add a parallel batch grid axis.
    input_dim, output_dim, hidden, batch = 4, 2, 128, 8

    key = jax.random.PRNGKey(0)
    k_params, k_state = jax.random.split(key)
    params = init_params(k_params, input_dim, hidden, output_dim)
    state = jax.random.normal(k_state, (batch, input_dim), jnp.float32)

    probs, value = actor_critic_forward(state, params)
    probs, value = jax.block_until_ready((probs, value))

    # sanity: shapes match the torch module; softmax rows sum to 1
    assert probs.shape == (batch, output_dim)
    assert value.shape == (batch, 1)
    assert jnp.allclose(jnp.sum(probs, axis=-1), 1.0, atol=1e-4)

    # compare against pure-JAX reference
    ref_probs, ref_value = reference_forward(state, params)
    assert jnp.allclose(probs, ref_probs, atol=1e-4, rtol=1e-4)
    assert jnp.allclose(value, ref_value, atol=1e-4, rtol=1e-4)

    print("KERNEL_OK")
</pallas_src>

<mosaic_0001>
module attributes {stable_mosaic.version = 11 : i64} {
  func.func @actor_critic_kernel(%arg0: memref<8x4xf32, #tpu.memory_space<vmem>>, %arg1: memref<4x256xf32, #tpu.memory_space<vmem>>, %arg2: memref<1x256xf32, #tpu.memory_space<vmem>>, %arg3: memref<256x128xf32, #tpu.memory_space<vmem>>, %arg4: memref<1x128xf32, #tpu.memory_space<vmem>>, %arg5: memref<8x128xf32, #tpu.memory_space<vmem>>) attributes {dimension_semantics = [], scalar_prefetch = 0 : i64, scratch_operands = 0 : i64, tpu.core_type = #tpu.core_type<tc>} {
    %c0 = arith.constant 0 : index
    %c0_0 = arith.constant 0 : index
    %0 = vector.load %arg0[%c0, %c0_0] : memref<8x4xf32, #tpu.memory_space<vmem>>, vector<8x4xf32>
    %c0_1 = arith.constant 0 : index
    %c0_2 = arith.constant 0 : index
    %1 = vector.load %arg1[%c0_1, %c0_2] : memref<4x256xf32, #tpu.memory_space<vmem>>, vector<4x256xf32>
    %cst = arith.constant dense<0.000000e+00> : vector<8x256xf32>
    %2 = tpu.matmul %0, %1, %cst {dimension_numbers = #tpu.dot_dimension_numbers<[1], [0], [0], [1], [0, 0, 1, 1], [], []>} : vector<8x4xf32>, vector<4x256xf32>, vector<8x256xf32> -> vector<8x256xf32>
    %c0_3 = arith.constant 0 : index
    %c0_4 = arith.constant 0 : index
    %3 = vector.load %arg2[%c0_3, %c0_4] : memref<1x256xf32, #tpu.memory_space<vmem>>, vector<1x256xf32>
    %4 = vector.broadcast %3 : vector<1x256xf32> to vector<8x256xf32>
    %5 = arith.addf %2, %4 : vector<8x256xf32>
    %cst_5 = arith.constant 0.000000e+00 : f32
    %6 = vector.broadcast %cst_5 : f32 to vector<8x256xf32>
    %7 = arith.maximumf %5, %6 : vector<8x256xf32>
    %c0_6 = arith.constant 0 : index
    %c0_7 = arith.constant 0 : index
    %8 = vector.load %arg3[%c0_6, %c0_7] : memref<256x128xf32, #tpu.memory_space<vmem>>, vector<256x128xf32>
    %cst_8 = arith.constant dense<0.000000e+00> : vector<8x128xf32>
    %9 = tpu.matmul %7, %8, %cst_8 {dimension_numbers = #tpu.dot_dimension_numbers<[1], [0], [0], [1], [0, 0, 1, 1], [], []>} : vector<8x256xf32>, vector<256x128xf32>, vector<8x128xf32> -> vector<8x128xf32>
    %c0_9 = arith.constant 0 : index
    %c0_10 = arith.constant 0 : index
    %10 = vector.load %arg4[%c0_9, %c0_10] : memref<1x128xf32, #tpu.memory_space<vmem>>, vector<1x128xf32>
    %11 = vector.broadcast %10 : vector<1x128xf32> to vector<8x128xf32>
    %12 = arith.addf %9, %11 : vector<8x128xf32>
    %13 = tpu.iota {dimensions = array<i32: 1>} : vector<8x128xi32>
    %c2_i32 = arith.constant 2 : i32
    %14 = vector.broadcast %c2_i32 : i32 to vector<8x128xi32>
    %15 = arith.cmpi slt, %13, %14 : vector<8x128xi32>
    %cst_11 = arith.constant -1.000000e+30 : f32
    %16 = vector.broadcast %cst_11 : f32 to vector<8x128xf32>
    %17 = arith.select %15, %12, %16 : vector<8x128xi1>, vector<8x128xf32>
    %cst_12 = arith.constant dense<0xFF800000> : vector<8xf32>
    %18 = vector.multi_reduction <maximumf>, %17, %cst_12 [1] : vector<8x128xf32> to vector<8xf32>
    %19 = vector.shape_cast %18 : vector<8xf32> to vector<8x1xf32>
    %20 = vector.broadcast %19 : vector<8x1xf32> to vector<8x128xf32>
    %21 = arith.subf %17, %20 : vector<8x128xf32>
    %22 = math.exp %21 : vector<8x128xf32>
    %cst_13 = arith.constant 0.000000e+00 : f32
    %23 = vector.broadcast %cst_13 : f32 to vector<8x128xf32>
    %24 = arith.select %15, %22, %23 : vector<8x128xi1>, vector<8x128xf32>
    %cst_14 = arith.constant dense<0.000000e+00> : vector<8xf32>
    %25 = vector.multi_reduction <add>, %24, %cst_14 [1] : vector<8x128xf32> to vector<8xf32>
    %26 = vector.shape_cast %25 : vector<8xf32> to vector<8x1xf32>
    %27 = vector.broadcast %26 : vector<8x1xf32> to vector<8x128xf32>
    %28 = arith.divf %24, %27 : vector<8x128xf32>
    %29 = arith.select %15, %28, %12 : vector<8x128xi1>, vector<8x128xf32>
    %c0_15 = arith.constant 0 : index
    %c0_16 = arith.constant 0 : index
    %30 = vector.load %arg5[%c0_15, %c0_16] : memref<8x128xf32, #tpu.memory_space<vmem>>, vector<8x128xf32>
    tpu.vector_store %arg5[%c0_15, %c0_16], %29 {strides = array<i32>} : memref<8x128xf32, #tpu.memory_space<vmem>>, vector<8x128xf32>,
    return
  }
}

</mosaic_0001>

<bundles_post_ra>
// kernel: actor_critic_forward.1
= control target key start
LH: loop header
LB: loop body
LE: loop exit
PB: predicated region body
PF: predicated region fallthrough
CT: control target
= control target key end

     0   :  { %vm40_vm0 = vcmask 1043456   ;;  %v324_v1 = vmov 0.0   ;;  %vm36_vm1 = vcmask 31744   ;;  %v24_v52 = vlaneseq  ;;  %s471_s1 = inlined_call_operand.vmem [shape: f32[4,256], index: 1, kind: input, shape index: {}]   ;;  %s472_s0 = inlined_call_operand.vmem [shape: f32[8,4], index: 0, kind: input, shape index: {}]   ;;  %s473_s3 = inlined_call_operand.vmem [shape: f32[256,128], index: 3, kind: input, shape index: {}]   ;;  %s474_s2 = inlined_call_operand.vmem [shape: f32[1,256], index: 2, kind: input, shape index: {}]   ;;  %s475_s4 = inlined_call_operand.vmem [shape: f32[1,128], index: 4, kind: input, shape index: {}]   ;;  %s476_s5 = inlined_call_operand.vmem [shape: f32[8,128], index: 5, kind: output, shape index: {}]  }
   0x1   :  { %v21_v0 = vld [vmem:[%s471_s1] sm:$0xff]  ;;  %109 = vmatprep.mubr.f32.mxu0 %v324_v1  ;;  %v135_v5 = vld [vmem:[%s473_s3 + $0x88] sm:$0xff]  ;;  %v136_v10 = vld [vmem:[%s473_s3 + $0x90] sm:$0xff] }
   0x2   :  { %v20_v2 = vld [vmem:[%s472_s0] sm:$0xff]  ;;  %v35_v4 = vcombine.high %v21_v0, %v21_v0  ;;  %v119_v7 = vld [vmem:[%s473_s3 + $0x8] sm:$0xff]  ;;  %v137_v11 = vld [vmem:[%s473_s3 + $0x98] sm:$0xff]  ;;  %v25_v53 = vshrl.u32 %v24_v52, 7  ;;  %v228_v1 = vand.u32 127, %v24_v52 }
   0x3   :  { %v134_v3 = vld [vmem:[%s473_s3 + $0x80] sm:$0xff]  ;;  %v120_v12 = vld [vmem:[%s473_s3 + $0x10] sm:$0xff]  ;;  %v290_v13 = vpack.c.bf16 %v137_v11, %v136_v10  ;;  %v121_v14 = vld [vmem:[%s473_s3 + $0x18] sm:$0xff] }
   0x4   :  { %v118_v6 = vld [vmem:[%s473_s3] sm:$0xff]  ;;  %v286_v8 = vpack.c.bf16 %v135_v5, %v134_v3  ;;  %247 = vmatprep.subr.msk.mxu0 %vm40_vm0, %v35_v4  ;;  %v139_v16 = vld [vmem:[%s473_s3 + $0xa8] sm:$0xff]  ;;  %v292_v17 = vpack.c.bf16 %v121_v14, %v120_v12  ;;  %v140_v21 = vld [vmem:[%s473_s3 + $0xb0] sm:$0xff]  ;;  %v26_v54 = vsub.s32 0, %v25_v53  ;;  %v30_v56 = vsub.s32 1, %v25_v53 }
   0x5   :  { %v288_v9 = vpack.c.bf16 %v119_v7, %v118_v6  ;;  %v138_v15 = vld [vmem:[%s473_s3 + $0xa0] sm:$0xff]  ;;  %248 = vmatpush1.msk.msra.mxu0 %vm40_vm0, %v21_v0  ;;  %v123_v20 = vld [vmem:[%s473_s3 + $0x28] sm:$0xff]  ;;  %v141_v22 = vld [vmem:[%s473_s3 + $0xb8] sm:$0xff]  ;;  %vm229_vm2 = vcmp.lt.s32.totalorder %v228_v1, 2 }
   0x6   :  { %287 = vmatprep.subr.bf16.mxu1 %v286_v8  ;;  %249 = vmatmul.mubr.msk.f32.vlgmr.msra.gmra.mrb[0].mxu0 %vm36_vm1, %v20_v2  ;;  %v294_v18 = vpack.c.bf16 %v139_v16, %v138_v15  ;;  %v122_v19 = vld [vmem:[%s473_s3 + $0x20] sm:$0xff]  ;;  %v298_v24 = vpack.c.bf16 %v141_v22, %v140_v21  ;;  %v124_v25 = vld [vmem:[%s473_s3 + $0x30] sm:$0xff]  ;;  %v125_v26 = vld [vmem:[%s473_s3 + $0x38] sm:$0xff] }
   0x7   :  { %289 = vmatpush3.bf16.msra.mxu1 %v288_v9  ;;  %v296_v23 = vpack.c.bf16 %v123_v20, %v122_v19  ;;  %v142_v27 = vld [vmem:[%s473_s3 + $0xc0] sm:$0xff]  ;;  %v143_v28 = vld [vmem:[%s473_s3 + $0xc8] sm:$0xff]  ;;  %v300_v29 = vpack.c.bf16 %v125_v26, %v124_v25  ;;  %v144_v33 = vld [vmem:[%s473_s3 + $0xd0] sm:$0xff] }
   0x8   :  { %291 = vmatprep.subr.bf16.mxu1 %v290_v13  ;;  %v302_v30 = vpack.c.bf16 %v143_v28, %v142_v27  ;;  %v126_v31 = vld [vmem:[%s473_s3 + $0x40] sm:$0xff]  ;;  %v127_v32 = vld [vmem:[%s473_s3 + $0x48] sm:$0xff]  ;;  %v145_v34 = vld [vmem:[%s473_s3 + $0xd8] sm:$0xff] }
   0x9   :  { %v304_v35 = vpack.c.bf16 %v127_v32, %v126_v31  ;;  %v306_v36 = vpack.c.bf16 %v145_v34, %v144_v33  ;;  %v128_v37 = vld [vmem:[%s473_s3 + $0x50] sm:$0xff]  ;;  %v129_v38 = vld [vmem:[%s473_s3 + $0x58] sm:$0xff]  ;;  %v146_v39 = vld [vmem:[%s473_s3 + $0xe0] sm:$0xff] }
   0xa   :  { %v147_v40 = vld [vmem:[%s473_s3 + $0xe8] sm:$0xff]  ;;  %v308_v41 = vpack.c.bf16 %v129_v38, %v128_v37  ;;  %v130_v43 = vld [vmem:[%s473_s3 + $0x60] sm:$0xff]  ;;  %v148_v46 = vld [vmem:[%s473_s3 + $0xf0] sm:$0xff] }
   0xb   :  { %293 = vmatpush3.bf16.msra.mxu1 %v292_v17  ;;  %v310_v42 = vpack.c.bf16 %v147_v40, %v146_v39  ;;  %v131_v44 = vld [vmem:[%s473_s3 + $0x68] sm:$0xff]  ;;  %v149_v47 = vld [vmem:[%s473_s3 + $0xf8] sm:$0xff]  ;;  %v132_v49 = vld [vmem:[%s473_s3 + $0x70] sm:$0xff] }
   0xc   :  { %295 = vmatprep.subr.bf16.mxu1 %v294_v18  ;;  %v312_v45 = vpack.c.bf16 %v131_v44, %v130_v43  ;;  %v314_v48 = vpack.c.bf16 %v149_v47, %v148_v46  ;;  %v133_v50 = vld [vmem:[%s473_s3 + $0x78] sm:$0xff]  ;;  %v22_v55 = vld [vmem:[%s474_s2] sm:$0x3] }
   0xd   :  { %v316_v51 = vpack.c.bf16 %v133_v50, %v132_v49  ;;  %v27_v57 = vrot.slane %v22_v55, %v26_v54  ;;  %v31_v58 = vrot.slane %v22_v55, %v30_v56  ;;  %v250_v4 = vld [vmem:[%s475_s4] ss:$0 sm:$0xff] }
   0xf   :  { %297 = vmatpush3.bf16.msra.mxu1 %v296_v23 }
  0x10   :  { %299 = vmatprep.subr.bf16.mxu1 %v298_v24 }
  0x13   :  { %301 = vmatpush3.bf16.msra.mxu1 %v300_v29 }
  0x14   :  { %303 = vmatprep.subr.bf16.mxu1 %v302_v30 }
  0x17   :  { %305 = vmatpush3.bf16.msra.mxu1 %v304_v35 }
  0x18   :  { %307 = vmatprep.subr.bf16.mxu1 %v306_v36 }
  0x1b   :  { %309 = vmatpush3.bf16.msra.mxu1 %v308_v41 }
  0x1c   :  { %311 = vmatprep.subr.bf16.mxu1 %v310_v42 }
  0x1f   :  { %313 = vmatpush3.bf16.msra.mxu1 %v312_v45 }
  0x20   :  { %315 = vmatprep.subr.bf16.mxu1 %v314_v48 }
  0x23   :  { %317 = vmatpush3.bf16.msra.mxu1 %v316_v51 }
  0xd9   :  { %v111_v59 = vpop.f32.mrb[0].mxu0 }
  0xda   :  { %v112_v60 = vadd.f32 %v111_v59, %v27_v57  ;;  %v113_v61 = vpop.f32.mrb[1].mxu0 }
  0xdb   :  { %v114_v62 = vadd.f32 %v113_v61, %v31_v58 }
  0xdc   :  { %v116_v0 = vmax.f32 %v112_v60, 0.0 }
  0xdd   :  { %v117_v63 = vmax.f32 %v114_v62, 0.0 }
  0xdf   :  { %221 = vmatprep.mubr.f32.mxu1 %v117_v63 }
  0xe0   :  { %222 = vmatmul.mubr.f32.vlgmr.msra.gmra.mrb[0].mxu1 %v116_v0 }
 0x1b3   :  { %v283_v2 = vpop.f32.mrb[0].mxu1 }
 0x1b4   :  { %v284_v3 = vpop.f32.mrb[1].mxu1 }
 0x1b5   :  { %v285_v5 = vadd.f32 %v284_v3, %v283_v2 }
 0x1b7   :  { %v224_v6 = vadd.f32 %v285_v5, %v250_v4 }
 0x1b9   :  { %v230_v7 = vsel %vm229_vm2, %v224_v6, -1e+30 }
 0x1ba   :  { %231 = vmax.xlane.f32.xlu0 %v230_v7 }
 0x247   :  { %v232_v8 = vpop.xlane.xlu0 %231 }
 0x248   :  { %v233_v9 = vsub.f32 %v230_v7, %v232_v8 }
 0x24a   :  { %v234_v10 = vmul.f32 1.442695, %v233_v9 }
 0x24c   :  { %320 = vpow2.f32 %v234_v10 }
 0x256   :  { %v321_v11 = vpop.eup %320 }
 0x257   :  { %v236_v12 = vsel %vm229_vm2, %v321_v11, 0.0 }
 0x258   :  { %237 = vadd.xlane.f32.xlu0 %v236_v12 }
 0x2e5   :  { %v238_v13 = vpop.xlane.xlu0 %237 }
 0x2e6   :  { %322 = vrcp.f32 %v238_v13 }
 0x2f0   :  { %v323_v14 = vpop.eup %322 }
 0x2f1   :  { %v240_v15 = vmul.f32 %v323_v14, %v236_v12 }
 0x2f3   :  { %v241_v16 = vsel %vm229_vm2, %v240_v15, %v224_v6 }
 0x2f4   :  { %242 = vst [vmem:[%s476_s5] sm:$0xff] %v241_v16 }

</bundles_post_ra>
